<compile_context>
chip_gen: v6e
topology: v6e:2x2x1
jax: 0.10.0
libtpu: 0.0.40
codegen_flags: <defaults>
</compile_context>

<pallas_src>
import jax
import jax.numpy as jnp
import numpy as np
from jax.experimental import pallas as pl
from jax.experimental.pallas import tpu as pltpu


def combined_baseline_kernel(x_ref, abw_ref, w1p_ref, b1_ref,
                             w2_ref, b2_ref, w3p_ref, b3p_ref,
                             ab_out_ref, prob_out_ref):
    # Lane-dense compute layout: batch on the 128-lane axis, features on sublanes.
    x = x_ref[...]                                                # (1, TB)

    # autobaseline = Linear(1, 16, bias=False): K == 1 -> rank-1 broadcast multiply.
    ab = abw_ref[...] * x                                         # (16, TB)

    # Layer 1 fused with the autobaseline linear: ReLU((ab_w @ w1)^T * x + b1).
    h = jnp.maximum(w1p_ref[...] * x + b1_ref[...], 0.0)          # (H1, TB)

    # Layer 2 on the MXU: (H2, H1) @ (H1, TB); N = TB is lane-dense.
    h = jnp.maximum(
        jnp.dot(w2_ref[...], h, preferred_element_type=jnp.float32) + b2_ref[...],
        0.0)                                                      # (H2, TB)

    # Output layer (classes padded to 8 with -1e30 bias -> exp() == 0 contribution).
    logits = (jnp.dot(w3p_ref[...], h, preferred_element_type=jnp.float32)
              + b3p_ref[...])                                     # (Cp, TB)

    # Softmax over the class axis (sublane axis here == dim=1 of the (B, C) view).
    m = jnp.max(logits, axis=0, keepdims=True)
    e = jnp.exp(logits - m)
    denom = jnp.sum(e, axis=0, keepdims=True)
    # approx=False keeps the 1e-5 tolerance; approx=True (EUP vrcp) + a Newton step
    # is an option, but this kernel is memory-bound so it would not move wall clock.
    p = e * pl.reciprocal(denom, approx=False)                    # (Cp, TB)

    # In-kernel XLU transposes -> batch-major output tiles; stores are lane-masked
    # (16- / 7-wide) but store slots have plenty of slack in this mem-bound kernel.
    ab_out_ref[...] = ab.T.astype(ab_out_ref.dtype)               # (TB, 16)
    prob_out_ref[...] = p.T[:, :prob_out_ref.shape[1]].astype(prob_out_ref.dtype)


def _pick_tile(batch, cap=4096, min_steps=2):
    """Pick a lane-aligned batch tile and grid length.

    Big tiles amortize the ~0.35 us fixed per-grid-step pipeline overhead, but the
    batch-major output blocks cost ~2 KB/elem of lane-padded VMEM, so the tile is
    capped; >=2 grid steps are kept when the batch allows so the "parallel" axis can
    shard across v7x's two TensorCores.
    """
    b128 = pl.cdiv(batch, 128) * 128
    steps = pl.cdiv(b128, cap)
    if b128 >= min_steps * 128:
        steps = max(steps, min_steps)
    tb = pl.cdiv(pl.cdiv(b128, steps), 128) * 128
    return tb, steps


def combined_baseline_forward(x, params, tile_cap=4096):
    """x: (B, 1) float32. Returns (autobaseline (B, 16), probs (B, 7))."""
    B = x.shape[0]
    ab_w, w1, b1, w2, b2, w3, b3 = params          # (in, out)-layout weights
    F = ab_w.shape[1]                              # 16 autobaseline features
    H1 = w1.shape[1]
    H2 = w2.shape[1]
    C = w3.shape[1]                                # 7 classes
    Cp = 8                                         # class pad for the XLU transpose

    # Constant fold (once, outside the hot path): x @ ab_w @ w1 == x * (ab_w @ w1)
    # because the contraction dim of x is 1.
    w1p = ab_w @ w1                                # (1, H1)

    tb, n_steps = _pick_tile(B, cap=tile_cap)
    Bp = tb * n_steps

    # Lane-dense input: (B,1) -> (1,B) is layout-free; pad the ragged tail only.
    x_t = jnp.pad(jnp.reshape(x.astype(jnp.float32), (1, B)), ((0, 0), (0, Bp - B)))

    abw_t = ab_w.T                                 # (16, 1)
    w1p_t = w1p.T                                  # (H1, 1)
    b1_t = b1.reshape(1, H1).T                     # (H1, 1)
    w2_t = w2.T                                    # (H2, H1)
    b2_t = b2.reshape(1, H2).T                     # (H2, 1)
    # Pad classes 7 -> 8: zero weight row + -1e30 bias => exp() underflows to 0.
    w3p_t = jnp.pad(w3.T, ((0, Cp - C), (0, 0)))                       # (Cp, H2)
    b3p_t = jnp.pad(b3.reshape(1, C).T, ((0, Cp - C), (0, 0)),
                    constant_values=-1e30)                             # (Cp, 1)

    def resident(a):
        # Whole-array block, same index every grid step -> DMA'd once, VMEM-resident.
        return pl.BlockSpec(a.shape, lambda i: (0, 0))

    weights = (abw_t, w1p_t, b1_t, w2_t, b2_t, w3p_t, b3p_t)
    weight_elems = sum(int(np.prod(w.shape)) for w in weights)

    cost = pl.CostEstimate(
        flops=Bp * (F + 2 * H1 + 2 * H1 * H2 + 2 * H2 * Cp + 6 * Cp),
        transcendentals=Bp * (Cp + 1),
        bytes_accessed=Bp * 4 * (1 + F + C) + 4 * weight_elems,
    )

    f = pl.pallas_call(
        combined_baseline_kernel,
        out_shape=(
            jax.ShapeDtypeStruct((Bp, F), jnp.float32),
            jax.ShapeDtypeStruct((Bp, C), jnp.float32),
        ),
        grid=(n_steps,),
        in_specs=[pl.BlockSpec((1, tb), lambda i: (0, i))] +     # x, batch on lanes
                 [resident(w) for w in weights],
        out_specs=(
            pl.BlockSpec((tb, F), lambda i: (i, 0)),             # batch-major out
            pl.BlockSpec((tb, C), lambda i: (i, 0)),
        ),
        compiler_params=pltpu.CompilerParams(
            dimension_semantics=("parallel",),                   # megacore on v7x
            vmem_limit_bytes=32 * 1024 * 1024),
        cost_estimate=cost,
    )
    ab, prob = f(x_t, *weights)

    if Bp != B:                                    # drop padded rows (no transpose)
        ab, prob = ab[:B], prob[:B]
    return ab, prob


def _torch_like_linear_init(key, fan_in, fan_out):
    """Deterministic init mimicking nn.Linear default (uniform +/- 1/sqrt(fan_in))."""
    kw, kb = jax.random.split(key)
    bound = 1.0 / np.sqrt(fan_in)
    w = jax.random.uniform(kw, (fan_in, fan_out), jnp.float32, -bound, bound)
    b = jax.random.uniform(kb, (1, fan_out), jnp.float32, -bound, bound)
    return w, b


def make_params(key, hidden_layers=(32, 32)):
    k_ab, k1, k2, k3 = jax.random.split(key, 4)
    # initial_baseline: deterministic 16-vector copied into the (1,16) weight of the
    # Linear(1, 16, bias=False) autobaseline model.
    initial_baseline = jnp.linspace(0.0, 1.0, 16, dtype=jnp.float32)
    ab_w = initial_baseline.reshape(1, 16)

    h1, h2 = hidden_layers
    w1, b1 = _torch_like_linear_init(k1, 16, h1)
    w2, b2 = _torch_like_linear_init(k2, h1, h2)
    w3, b3 = _torch_like_linear_init(k3, h2, 7)
    return (ab_w, w1, b1, w2, b2, w3, b3)


def reference_forward(x, params):
    """Pure-JAX reference of the PyTorch forward for validation."""
    ab_w, w1, b1, w2, b2, w3, b3 = params
    ab = x @ ab_w
    h = jax.nn.relu(ab @ w1 + b1)
    h = jax.nn.relu(h @ w2 + b2)
    logits = h @ w3 + b3
    return ab, jax.nn.softmax(logits, axis=1)


if __name__ == "__main__":
    key = jax.random.PRNGKey(0)
    k_x, k_p = jax.random.split(key)

    B = 8
    x = jax.random.normal(k_x, (B, 1), jnp.float32)   # input: (batch, 1)
    params = make_params(k_p, hidden_layers=(32, 32))

    fwd = jax.jit(combined_baseline_forward)           # lets XLA fuse pad/slice
    ab_out, prob_out = fwd(x, params)
    jax.block_until_ready((ab_out, prob_out))

    ab_ref, prob_ref = reference_forward(x, params)
    assert ab_out.shape == (B, 16) and prob_out.shape == (B, 7)
    np.testing.assert_allclose(np.asarray(ab_out), np.asarray(ab_ref),
                               rtol=1e-5, atol=1e-5)
    np.testing.assert_allclose(np.asarray(prob_out), np.asarray(prob_ref),
                               rtol=1e-5, atol=1e-5)

    print("KERNEL_OK")
</pallas_src>

<mosaic_0001>
module attributes {stable_mosaic.version = 11 : i64} {
  func.func @combined_baseline_kernel(%arg0: i32, %arg1: memref<1x128xf32, #tpu.memory_space<vmem>>, %arg2: memref<16x1xf32, #tpu.memory_space<vmem>>, %arg3: memref<32x1xf32, #tpu.memory_space<vmem>>, %arg4: memref<32x1xf32, #tpu.memory_space<vmem>>, %arg5: memref<32x32xf32, #tpu.memory_space<vmem>>, %arg6: memref<32x1xf32, #tpu.memory_space<vmem>>, %arg7: memref<8x32xf32, #tpu.memory_space<vmem>>, %arg8: memref<8x1xf32, #tpu.memory_space<vmem>>, %arg9: memref<128x16xf32, #tpu.memory_space<vmem>>, %arg10: memref<128x7xf32, #tpu.memory_space<vmem>>) attributes {dimension_semantics = [#tpu.dimension_semantics<parallel>], iteration_bounds = array<i64: 1>, scalar_prefetch = 0 : i64, scratch_operands = 0 : i64, tpu.core_type = #tpu.core_type<tc>, window_params = [{transform_indices = @transform_0, window_bounds = array<i64: 1, 128>}, {pipeline_mode = #tpu.pipeline_mode<synchronous>, transform_indices = @transform_1, window_bounds = array<i64: 16, 1>}, {pipeline_mode = #tpu.pipeline_mode<synchronous>, transform_indices = @transform_2, window_bounds = array<i64: 32, 1>}, {pipeline_mode = #tpu.pipeline_mode<synchronous>, transform_indices = @transform_3, window_bounds = array<i64: 32, 1>}, {pipeline_mode = #tpu.pipeline_mode<synchronous>, transform_indices = @transform_4, window_bounds = array<i64: 32, 32>}, {pipeline_mode = #tpu.pipeline_mode<synchronous>, transform_indices = @transform_5, window_bounds = array<i64: 32, 1>}, {pipeline_mode = #tpu.pipeline_mode<synchronous>, transform_indices = @transform_6, window_bounds = array<i64: 8, 32>}, {pipeline_mode = #tpu.pipeline_mode<synchronous>, transform_indices = @transform_7, window_bounds = array<i64: 8, 1>}, {transform_indices = @transform_8, window_bounds = array<i64: 128, 16>}, {transform_indices = @transform_9, window_bounds = array<i64: 128, 7>}]} {
    %c0 = arith.constant 0 : index
    %c0_0 = arith.constant 0 : index
    %0 = vector.load %arg1[%c0, %c0_0] : memref<1x128xf32, #tpu.memory_space<vmem>>, vector<1x128xf32>
    %c0_1 = arith.constant 0 : index
    %c0_2 = arith.constant 0 : index
    %1 = vector.load %arg2[%c0_1, %c0_2] : memref<16x1xf32, #tpu.memory_space<vmem>>, vector<16x1xf32>
    %2 = vector.broadcast %1 : vector<16x1xf32> to vector<16x128xf32>
    %3 = vector.broadcast %0 : vector<1x128xf32> to vector<16x128xf32>
    %4 = arith.mulf %2, %3 : vector<16x128xf32>
    %c0_3 = arith.constant 0 : index
    %c0_4 = arith.constant 0 : index
    %5 = vector.load %arg3[%c0_3, %c0_4] : memref<32x1xf32, #tpu.memory_space<vmem>>, vector<32x1xf32>
    %6 = vector.broadcast %5 : vector<32x1xf32> to vector<32x128xf32>
    %7 = vector.broadcast %0 : vector<1x128xf32> to vector<32x128xf32>
    %8 = arith.mulf %6, %7 : vector<32x128xf32>
    %c0_5 = arith.constant 0 : index
    %c0_6 = arith.constant 0 : index
    %9 = vector.load %arg4[%c0_5, %c0_6] : memref<32x1xf32, #tpu.memory_space<vmem>>, vector<32x1xf32>
    %10 = vector.broadcast %9 : vector<32x1xf32> to vector<32x128xf32>
    %11 = arith.addf %8, %10 : vector<32x128xf32>
    %cst = arith.constant 0.000000e+00 : f32
    %12 = vector.broadcast %cst : f32 to vector<32x128xf32>
    %13 = arith.maximumf %11, %12 : vector<32x128xf32>
    %c0_7 = arith.constant 0 : index
    %c0_8 = arith.constant 0 : index
    %14 = vector.load %arg5[%c0_7, %c0_8] : memref<32x32xf32, #tpu.memory_space<vmem>>, vector<32x32xf32>
    %cst_9 = arith.constant dense<0.000000e+00> : vector<32x128xf32>
    %15 = tpu.matmul %14, %13, %cst_9 {dimension_numbers = #tpu.dot_dimension_numbers<[1], [0], [0], [1], [0, 0, 1, 1], [], []>} : vector<32x32xf32>, vector<32x128xf32>, vector<32x128xf32> -> vector<32x128xf32>
    %c0_10 = arith.constant 0 : index
    %c0_11 = arith.constant 0 : index
    %16 = vector.load %arg6[%c0_10, %c0_11] : memref<32x1xf32, #tpu.memory_space<vmem>>, vector<32x1xf32>
    %17 = vector.broadcast %16 : vector<32x1xf32> to vector<32x128xf32>
    %18 = arith.addf %15, %17 : vector<32x128xf32>
    %cst_12 = arith.constant 0.000000e+00 : f32
    %19 = vector.broadcast %cst_12 : f32 to vector<32x128xf32>
    %20 = arith.maximumf %18, %19 : vector<32x128xf32>
    %c0_13 = arith.constant 0 : index
    %c0_14 = arith.constant 0 : index
    %21 = vector.load %arg7[%c0_13, %c0_14] : memref<8x32xf32, #tpu.memory_space<vmem>>, vector<8x32xf32>
    %cst_15 = arith.constant dense<0.000000e+00> : vector<8x128xf32>
    %22 = tpu.matmul %21, %20, %cst_15 {dimension_numbers = #tpu.dot_dimension_numbers<[1], [0], [0], [1], [0, 0, 1, 1], [], []>} : vector<8x32xf32>, vector<32x128xf32>, vector<8x128xf32> -> vector<8x128xf32>
    %c0_16 = arith.constant 0 : index
    %c0_17 = arith.constant 0 : index
    %23 = vector.load %arg8[%c0_16, %c0_17] : memref<8x1xf32, #tpu.memory_space<vmem>>, vector<8x1xf32>
    %24 = vector.broadcast %23 : vector<8x1xf32> to vector<8x128xf32>
    %25 = arith.addf %22, %24 : vector<8x128xf32>
    %cst_18 = arith.constant dense<0xFF800000> : vector<128xf32>
    %26 = vector.multi_reduction <maximumf>, %25, %cst_18 [0] : vector<8x128xf32> to vector<128xf32>
    %27 = vector.shape_cast %26 : vector<128xf32> to vector<1x128xf32>
    %28 = vector.broadcast %27 : vector<1x128xf32> to vector<8x128xf32>
    %29 = arith.subf %25, %28 : vector<8x128xf32>
    %30 = math.exp %29 : vector<8x128xf32>
    %cst_19 = arith.constant dense<0.000000e+00> : vector<128xf32>
    %31 = vector.multi_reduction <add>, %30, %cst_19 [0] : vector<8x128xf32> to vector<128xf32>
    %32 = vector.shape_cast %31 : vector<128xf32> to vector<1x128xf32>
    %33 = tpu.reciprocal %32 : vector<1x128xf32> -> vector<1x128xf32>
    %34 = vector.broadcast %33 : vector<1x128xf32> to vector<8x128xf32>
    %35 = arith.mulf %30, %34 : vector<8x128xf32>
    %36 = tpu.transpose %4, [1, 0] : vector<16x128xf32> -> vector<128x16xf32>
    %c0_20 = arith.constant 0 : index
    %c0_21 = arith.constant 0 : index
    %37 = vector.load %arg9[%c0_20, %c0_21] : memref<128x16xf32, #tpu.memory_space<vmem>>, vector<128x16xf32>
    tpu.vector_store %arg9[%c0_20, %c0_21], %36 {strides = array<i32>} : memref<128x16xf32, #tpu.memory_space<vmem>>, vector<128x16xf32>,
    %38 = tpu.transpose %35, [1, 0] : vector<8x128xf32> -> vector<128x8xf32>
    %39 = vector.extract_strided_slice %38 {offsets = [0, 0], sizes = [128, 7], strides = [1, 1]} : vector<128x8xf32> to vector<128x7xf32>
    %c0_22 = arith.constant 0 : index
    %c0_23 = arith.constant 0 : index
    %40 = vector.load %arg10[%c0_22, %c0_23] : memref<128x7xf32, #tpu.memory_space<vmem>>, vector<128x7xf32>
    tpu.vector_store %arg10[%c0_22, %c0_23], %39 {strides = array<i32>} : memref<128x7xf32, #tpu.memory_space<vmem>>, vector<128x7xf32>,
    return
  }
  func.func @transform_0(%arg0: i32) -> (i32, i32) {
    %c0_i32 = arith.constant 0 : i32
    %c0_i32_0 = arith.constant 0 : i32
    return %c0_i32, %arg0 : i32, i32
  }
  func.func @transform_1(%arg0: i32) -> (i32, i32) {
    %c0_i32 = arith.constant 0 : i32
    %c0_i32_0 = arith.constant 0 : i32
    %c0_i32_1 = arith.constant 0 : i32
    return %c0_i32, %c0_i32_0 : i32, i32
  }
  func.func @transform_2(%arg0: i32) -> (i32, i32) {
    %c0_i32 = arith.constant 0 : i32
    %c0_i32_0 = arith.constant 0 : i32
    %c0_i32_1 = arith.constant 0 : i32
    return %c0_i32, %c0_i32_0 : i32, i32
  }
  func.func @transform_3(%arg0: i32) -> (i32, i32) {
    %c0_i32 = arith.constant 0 : i32
    %c0_i32_0 = arith.constant 0 : i32
    %c0_i32_1 = arith.constant 0 : i32
    return %c0_i32, %c0_i32_0 : i32, i32
  }
  func.func @transform_4(%arg0: i32) -> (i32, i32) {
    %c0_i32 = arith.constant 0 : i32
    %c0_i32_0 = arith.constant 0 : i32
    %c0_i32_1 = arith.constant 0 : i32
    return %c0_i32, %c0_i32_0 : i32, i32
  }
  func.func @transform_5(%arg0: i32) -> (i32, i32) {
    %c0_i32 = arith.constant 0 : i32
    %c0_i32_0 = arith.constant 0 : i32
    %c0_i32_1 = arith.constant 0 : i32
    return %c0_i32, %c0_i32_0 : i32, i32
  }
  func.func @transform_6(%arg0: i32) -> (i32, i32) {
    %c0_i32 = arith.constant 0 : i32
    %c0_i32_0 = arith.constant 0 : i32
    %c0_i32_1 = arith.constant 0 : i32
    return %c0_i32, %c0_i32_0 : i32, i32
  }
  func.func @transform_7(%arg0: i32) -> (i32, i32) {
    %c0_i32 = arith.constant 0 : i32
    %c0_i32_0 = arith.constant 0 : i32
    %c0_i32_1 = arith.constant 0 : i32
    return %c0_i32, %c0_i32_0 : i32, i32
  }
  func.func @transform_8(%arg0: i32) -> (i32, i32) {
    %c0_i32 = arith.constant 0 : i32
    %c0_i32_0 = arith.constant 0 : i32
    return %arg0, %c0_i32 : i32, i32
  }
  func.func @transform_9(%arg0: i32) -> (i32, i32) {
    %c0_i32 = arith.constant 0 : i32
    %c0_i32_0 = arith.constant 0 : i32
    return %arg0, %c0_i32 : i32, i32
  }
}

</mosaic_0001>

<bundles_post_ra>
// kernel: combined_baseline_forward.1
= control target key start
LH: loop header
LB: loop body
LE: loop exit
PB: predicated region body
PF: predicated region fallthrough
CT: control target
= control target key end

     0   :  { %v498_v0 = vmov 0   ;;  %vm140_vm0 = vcmask 261120   ;;  %v499_v50 = vmov 0.0   ;;  %vm500_vm1 = vmmov 0   ;;  %s747_s3 = inlined_call_operand.vmem [shape: f32[32,1], index: 3, kind: input, shape index: {}]   ;;  %s748_s2 = inlined_call_operand.vmem [shape: f32[32,1], index: 2, kind: input, shape index: {}]   ;;  %s749_s5 = inlined_call_operand.vmem [shape: f32[32,1], index: 5, kind: input, shape index: {}]   ;;  %s750_s4 = inlined_call_operand.vmem [shape: f32[32,32], index: 4, kind: input, shape index: {}]   ;;  %s751_s7 = inlined_call_operand.vmem [shape: f32[8,1], index: 7, kind: input, shape index: {}]   ;;  %s752_s1 = inlined_call_operand.vmem [shape: f32[16,1], index: 1, kind: input, shape index: {}]   ;;  %s753_s0 = inlined_call_operand.vmem [shape: f32[1,128], index: 0, kind: input, shape index: {}]   ;;  %s754_s6 = inlined_call_operand.vmem [shape: f32[8,32], index: 6, kind: input, shape index: {}]   ;;  %s755_s8 = inlined_call_operand.vmem [shape: f32[128,16], index: 8, kind: output, shape index: {0}]   ;;  %s756_s9 = inlined_call_operand.vmem [shape: f32[128,7], index: 9, kind: output, shape index: {1}]  }
   0x1   :  { %493 = vset.pattern.permute.xlu1 %v498_v0  ;;  %492 = vset.pattern.permute.xlu0 %v498_v0  ;;  %v83_v1 = vld [vmem:[%s747_s3 + $0x18] sm:$0xff]  ;;  %v54_v3 = vld [vmem:[%s748_s2 + $0x10] sm:$0xff]  ;;  %v53_v4 = vld [vmem:[%s748_s2 + $0x8] sm:$0xff]  ;;  %vm371_vm2 = vcmask 130048   ;;  %vm420_vm3 = vcmask 56320  }
   0x2   :  { %v55_v2 = vld [vmem:[%s748_s2 + $0x18] sm:$0xff]  ;;  %101 = vperm.xlu1 %493, %v83_v1   ;;  %v82_v5 = vld [vmem:[%s747_s3 + $0x10] sm:$0xff]  ;;  %v52_v6 = vld [vmem:[%s748_s2] sm:$0xff]  ;;  %478 = vmatprep.subr.mxu1 %v499_v50 }
   0x3   :  { %73 = vperm.xlu0 %492, %v55_v2   ;;  %v81_v7 = vld [vmem:[%s747_s3 + $0x8] sm:$0xff]  ;;  %v80_v8 = vld [vmem:[%s747_s3] sm:$0xff]  ;;  %v119_v9 = vld [vmem:[%s749_s5 + $0x18] sm:$0xff]  ;;  %486 = vmatprep.mubr.msk.f32.mxu1 %vm500_vm1, %v499_v50 }
   0x4   :  { %v118_v10 = vld [vmem:[%s749_s5 + $0x10] sm:$0xff]  ;;  %v112_v11 = vld [vmem:[%s750_s4] sm:$0xff]  ;;  %v117_v12 = vld [vmem:[%s749_s5 + $0x8] sm:$0xff] }
   0x5   :  { %472 = vmatprep.mubr.msk.f32.mxu0 %vm140_vm0, %v112_v11  ;;  %v116_v13 = vld [vmem:[%s749_s5] sm:$0xff]  ;;  %v33_v16 = vld [vmem:[%s752_s1 + $0x8] sm:$0xff]  ;;  %v114_v41 = vld [vmem:[%s750_s4 + $0x10] sm:$0xff] }
   0x6   :  { %63 = vperm.xlu1 %493, %v53_v4   ;;  %v243_v14 = vld [vmem:[%s751_s7] sm:$0xff]  ;;  %v113_v40 = vld [vmem:[%s750_s4 + $0x8] sm:$0xff]  ;;  %v115_v44 = vld [vmem:[%s750_s4 + $0x18] sm:$0xff] }
   0x7   :  { %68 = vperm.xlu0 %492, %v54_v3   ;;  %v32_v15 = vld [vmem:[%s752_s1] sm:$0xff] }
   0x8   :  { %v445_v17 = vld [vmem:[%s753_s0] ss:$0 sm:$0xff] }
   0x9   :  { %v242_v63 = vld [vmem:[%s754_s6] sm:$0xff] }
   0xa   :  { %58 = vperm.xlu1 %493, %v52_v6  }
   0xb   :  { %96 = vperm.xlu0 %492, %v82_v5  }
   0xe   :  { %86 = vperm.xlu1 %493, %v80_v8  }
   0xf   :  { %91 = vperm.xlu0 %492, %v81_v7  }
  0x12   :  { %132 = vperm.xlu1 %493, %v118_v10  }
  0x13   :  { %137 = vperm.xlu0 %492, %v119_v9  }
  0x16   :  { %122 = vperm.xlu1 %493, %v116_v13  }
  0x17   :  { %127 = vperm.xlu0 %492, %v117_v12  }
  0x1a   :  { %36 = vperm.xlu1 %493, %v32_v15  }
  0x1b   :  { %246 = vperm.xlu0 %492, %v243_v14  }
  0x1f   :  { %41 = vperm.xlu0 %492, %v33_v16  }
  0x7d   :  { %v102_v18 = vpop.permute.xlu1 %101 }
  0x7e   :  { %v74_v19 = vpop.permute.xlu0 %73 }
  0x7f   :  { %v79_v20 = vmul.f32 %v445_v17, %v74_v19 }
  0x81   :  { %v107_v21 = vadd.f32 %v102_v18, %v79_v20  ;;  %v64_v23 = vpop.permute.xlu1 %63 }
  0x82   :  { %v69_v22 = vpop.permute.xlu0 %68  ;;  %v77_v29 = vmul.f32 %v445_v17, %v64_v23 }
  0x83   :  { %v111_v24 = vmax.f32 %v107_v21, 0.0  ;;  %v78_v25 = vmul.f32 %v445_v17, %v69_v22 }
  0x85   :  { %464 = vmatprep.subr.mxu0 %v111_v24  ;;  %v59_v27 = vpop.permute.xlu1 %58 }
  0x86   :  { %v97_v26 = vpop.permute.xlu0 %96  ;;  %465 = vmatpush3.msra.mxu0 %v111_v24  ;;  %v76_v31 = vmul.f32 %v445_v17, %v59_v27 }
  0x87   :  { %v106_v28 = vadd.f32 %v97_v26, %v78_v25 }
  0x89   :  { %v110_v30 = vmax.f32 %v106_v28, 0.0  ;;  %v87_v33 = vpop.permute.xlu1 %86 }
  0x8a   :  { %v92_v32 = vpop.permute.xlu0 %91  ;;  %v104_v35 = vadd.f32 %v87_v33, %v76_v31 }
  0x8b   :  { %v105_v34 = vadd.f32 %v92_v32, %v77_v29  ;;  %466 = vmatprep.subr.mxu0 %v110_v30 }
  0x8c   :  { %467 = vmatpush3.msra.mxu0 %v110_v30  ;;  %v108_v39 = vmax.f32 %v104_v35, 0.0 }
  0x8d   :  { %v109_v36 = vmax.f32 %v105_v34, 0.0  ;;  %v133_v38 = vpop.permute.xlu1 %132 }
  0x8e   :  { %v138_v37 = vpop.permute.xlu0 %137 }
  0x8f   :  { %468 = vmatprep.subr.mxu0 %v109_v36 }
  0x90   :  { %469 = vmatpush3.msra.mxu0 %v109_v36 }
  0x91   :  { %470 = vmatprep.subr.mxu0 %v108_v39  ;;  %v123_v43 = vpop.permute.xlu1 %122 }
  0x92   :  { %v128_v42 = vpop.permute.xlu0 %127  ;;  %471 = vmatpush3.msra.mxu0 %v108_v39 }
  0x93   :  { %473 = vmatmul.mubr.msk.f32.vlgmr.msra.gmra.mxu0 %vm140_vm0, %v113_v40 }
  0x94   :  { %475 = vmatprep.mubr.msk.f32.mxu0 %vm140_vm0, %v114_v41 }
  0x95   :  { %v37_v46 = vpop.permute.xlu1 %36 }
  0x96   :  { %v247_v45 = vpop.permute.xlu0 %246  ;;  %v50_v47 = vmul.f32 %v445_v17, %v37_v46 }
  0x97   :  { %476 = vmatmul.mubr.msk.f32.gmra.mxu0 %vm140_vm0, %v115_v44 }
  0x98   :  { %339 = vxpose.xlu1.b32.start [1/2] (short) %v50_v47, 128 }
  0x9a   :  { %v42_v48 = vpop.permute.xlu0 %41 }
  0x9b   :  { %v51_v49 = vmul.f32 %v445_v17, %v42_v48 }
  0x9d   :  { %340 = vxpose.xlu1.b32.end [2/2] (short) %v51_v49, 128 }
 0x115   :  { %v355_v18 = vpop.trf.xlu1 }
 0x116   :  { %372 = vst.msk [vmem:[%s755_s8] sm:$0xff] %vm371_vm2, %v355_v18 }
 0x119   :  { %v356_v21 = vpop.trf.xlu1 }
 0x11a   :  { %373 = vst.msk [vmem:[%s755_s8 + $0x8] sm:$0xff] %vm371_vm2, %v356_v21 }
 0x11d   :  { %v357_v22 = vpop.trf.xlu1 }
 0x11e   :  { %374 = vst.msk [vmem:[%s755_s8 + $0x10] sm:$0xff] %vm371_vm2, %v357_v22 }
 0x121   :  { %v358_v23 = vpop.trf.xlu1 }
 0x122   :  { %375 = vst.msk [vmem:[%s755_s8 + $0x18] sm:$0xff] %vm371_vm2, %v358_v23 }
 0x125   :  { %v359_v24 = vpop.trf.xlu1 }
 0x126   :  { %376 = vst.msk [vmem:[%s755_s8 + $0x20] sm:$0xff] %vm371_vm2, %v359_v24 }
 0x129   :  { %v360_v25 = vpop.trf.xlu1 }
 0x12a   :  { %377 = vst.msk [vmem:[%s755_s8 + $0x28] sm:$0xff] %vm371_vm2, %v360_v25 }
 0x12d   :  { %v361_v26 = vpop.trf.xlu1 }
 0x12e   :  { %378 = vst.msk [vmem:[%s755_s8 + $0x30] sm:$0xff] %vm371_vm2, %v361_v26 }
 0x131   :  { %v362_v27 = vpop.trf.xlu1 }
 0x132   :  { %379 = vst.msk [vmem:[%s755_s8 + $0x38] sm:$0xff] %vm371_vm2, %v362_v27 }
 0x135   :  { %v363_v28 = vpop.trf.xlu1 }
 0x136   :  { %380 = vst.msk [vmem:[%s755_s8 + $0x40] sm:$0xff] %vm371_vm2, %v363_v28 }
 0x139   :  { %v364_v29 = vpop.trf.xlu1 }
 0x13a   :  { %381 = vst.msk [vmem:[%s755_s8 + $0x48] sm:$0xff] %vm371_vm2, %v364_v29 }
 0x13d   :  { %v365_v30 = vpop.trf.xlu1 }
 0x13e   :  { %382 = vst.msk [vmem:[%s755_s8 + $0x50] sm:$0xff] %vm371_vm2, %v365_v30 }
 0x141   :  { %v366_v31 = vpop.trf.xlu1 }
 0x142   :  { %383 = vst.msk [vmem:[%s755_s8 + $0x58] sm:$0xff] %vm371_vm2, %v366_v31 }
 0x145   :  { %v367_v32 = vpop.trf.xlu1 }
 0x146   :  { %384 = vst.msk [vmem:[%s755_s8 + $0x60] sm:$0xff] %vm371_vm2, %v367_v32 }
 0x149   :  { %v368_v33 = vpop.trf.xlu1 }
 0x14a   :  { %385 = vst.msk [vmem:[%s755_s8 + $0x68] sm:$0xff] %vm371_vm2, %v368_v33 }
 0x14d   :  { %v369_v34 = vpop.trf.xlu1 }
 0x14e   :  { %386 = vst.msk [vmem:[%s755_s8 + $0x70] sm:$0xff] %vm371_vm2, %v369_v34 }
 0x151   :  { %v370_v35 = vpop.trf.xlu1 }
 0x152   :  { %387 = vst.msk [vmem:[%s755_s8 + $0x78] sm:$0xff] %vm371_vm2, %v370_v35 }
 0x153   :  { %v474_v51 = vpop.f32.mrf.mxu0 }
 0x154   :  { %v225_v56 = vadd.f32 %v474_v51, %v128_v42 }
 0x155   :  { %v219_v52 = vpop.f32.mrf.mxu0 }
 0x156   :  { %v220_v59 = vadd.f32 %v219_v52, %v123_v43  ;;  %v239_v61 = vmax.f32 %v225_v56, 0.0 }
 0x157   :  { %v477_v53 = vpop.f32.mrf.mxu0 }
 0x158   :  { %v235_v54 = vadd.f32 %v477_v53, %v138_v37  ;;  %v238_v62 = vmax.f32 %v220_v59, 0.0 }
 0x159   :  { %v229_v55 = vpop.f32.mrf.mxu0 }
 0x15a   :  { %v241_v57 = vmax.f32 %v235_v54, 0.0  ;;  %v230_v58 = vadd.f32 %v229_v55, %v133_v38 }
 0x15c   :  { %v240_v60 = vmax.f32 %v230_v58, 0.0  ;;  %479 = vmatpush3.msra.mxu1 %v241_v57 }
 0x15d   :  { %480 = vmatprep.subr.mxu1 %v499_v50 }
 0x15e   :  { %481 = vmatpush3.msra.mxu1 %v240_v60 }
 0x15f   :  { %482 = vmatprep.subr.mxu1 %v499_v50 }
 0x160   :  { %483 = vmatpush3.msra.mxu1 %v239_v61 }
 0x161   :  { %484 = vmatprep.subr.mxu1 %v499_v50 }
 0x162   :  { %485 = vmatpush3.msra.mxu1 %v238_v62 }
 0x163   :  { %487 = vmatmul.mubr.msk.f32.vlgmr.msra.gmra.mxu1 %vm140_vm0, %v242_v63 }
 0x223   :  { %v318_v0 = vpop.f32.mrf.mxu1 }
 0x224   :  { %v319_v1 = vadd.f32 %v318_v0, %v247_v45 }
 0x225   :  { %v488_v2 = vpop.f32.mrf.mxu1 }
 0x226   :  { %v322_v3 = vrot.slane %v319_v1, 4 }
 0x228   :  { %v323_v4 = vmax.f32 %v319_v1, %v322_v3 }
 0x22a   :  { %v324_v5 = vrot.slane %v323_v4, 2 }
 0x22c   :  { %v325_v6 = vmax.f32 %v323_v4, %v324_v5 }
 0x22e   :  { %v326_v7 = vrot.slane %v325_v6, 1 }
 0x230   :  { %v327_v8 = vmax.f32 %v325_v6, %v326_v7 }
 0x232   :  { %v328_v9 = vsub.f32 %v319_v1, %v327_v8 }
 0x234   :  { %v329_v10 = vmul.f32 1.442695, %v328_v9 }
 0x236   :  { %494 = vpow2.f32 %v329_v10 }
 0x243   :  { %v495_v11 = vpop.eup %494 }
 0x244   :  { %v331_v12 = vrot.slane %v495_v11, 4 }
 0x246   :  { %v332_v13 = vadd.f32 %v495_v11, %v331_v12 }
 0x248   :  { %v333_v14 = vrot.slane %v332_v13, 2 }
 0x24a   :  { %v334_v15 = vadd.f32 %v333_v14, %v332_v13 }
 0x24c   :  { %v335_v16 = vrot.slane %v334_v15, 1 }
 0x24e   :  { %v336_v17 = vadd.f32 %v335_v16, %v334_v15 }
 0x250   :  { %496 = vrcp.f32 %v336_v17 }
 0x25d   :  { %v497_v19 = vpop.eup %496 }
 0x25e   :  { %v338_v20 = vmul.f32 %v497_v19, %v495_v11 }
 0x260   :  { %388 = vxpose.xlu0.b32.start.end [1/1] (short) %v338_v20, 128 }
 0x2dc   :  { %v404_v36 = vpop.trf.xlu0 }
 0x2dd   :  { %421 = vst.msk [vmem:[%s756_s9] sm:$0xff] %vm420_vm3, %v404_v36 }
 0x2e0   :  { %v405_v37 = vpop.trf.xlu0 }
 0x2e1   :  { %422 = vst.msk [vmem:[%s756_s9 + $0x8] sm:$0xff] %vm420_vm3, %v405_v37 }
 0x2e4   :  { %v406_v38 = vpop.trf.xlu0 }
 0x2e5   :  { %423 = vst.msk [vmem:[%s756_s9 + $0x10] sm:$0xff] %vm420_vm3, %v406_v38 }
 0x2e8   :  { %v407_v39 = vpop.trf.xlu0 }
 0x2e9   :  { %424 = vst.msk [vmem:[%s756_s9 + $0x18] sm:$0xff] %vm420_vm3, %v407_v39 }
 0x2ec   :  { %v408_v40 = vpop.trf.xlu0 }
 0x2ed   :  { %425 = vst.msk [vmem:[%s756_s9 + $0x20] sm:$0xff] %vm420_vm3, %v408_v40 }
 0x2f0   :  { %v409_v41 = vpop.trf.xlu0 }
 0x2f1   :  { %426 = vst.msk [vmem:[%s756_s9 + $0x28] sm:$0xff] %vm420_vm3, %v409_v41 }
 0x2f4   :  { %v410_v42 = vpop.trf.xlu0 }
 0x2f5   :  { %427 = vst.msk [vmem:[%s756_s9 + $0x30] sm:$0xff] %vm420_vm3, %v410_v42 }
 0x2f8   :  { %v411_v43 = vpop.trf.xlu0 }
 0x2f9   :  { %428 = vst.msk [vmem:[%s756_s9 + $0x38] sm:$0xff] %vm420_vm3, %v411_v43 }
 0x2fc   :  { %v412_v44 = vpop.trf.xlu0 }
 0x2fd   :  { %429 = vst.msk [vmem:[%s756_s9 + $0x40] sm:$0xff] %vm420_vm3, %v412_v44 }
 0x300   :  { %v413_v45 = vpop.trf.xlu0 }
 0x301   :  { %430 = vst.msk [vmem:[%s756_s9 + $0x48] sm:$0xff] %vm420_vm3, %v413_v45 }
 0x304   :  { %v414_v46 = vpop.trf.xlu0 }
 0x305   :  { %431 = vst.msk [vmem:[%s756_s9 + $0x50] sm:$0xff] %vm420_vm3, %v414_v46 }
 0x308   :  { %v415_v47 = vpop.trf.xlu0 }
 0x309   :  { %432 = vst.msk [vmem:[%s756_s9 + $0x58] sm:$0xff] %vm420_vm3, %v415_v47 }
 0x30c   :  { %v416_v48 = vpop.trf.xlu0 }
 0x30d   :  { %433 = vst.msk [vmem:[%s756_s9 + $0x60] sm:$0xff] %vm420_vm3, %v416_v48 }
 0x310   :  { %v417_v49 = vpop.trf.xlu0 }
 0x311   :  { %434 = vst.msk [vmem:[%s756_s9 + $0x68] sm:$0xff] %vm420_vm3, %v417_v49 }
 0x314   :  { %v418_v50 = vpop.trf.xlu0 }
 0x315   :  { %435 = vst.msk [vmem:[%s756_s9 + $0x70] sm:$0xff] %vm420_vm3, %v418_v50 }
 0x318   :  { %v419_v51 = vpop.trf.xlu0 }
 0x319   :  { %436 = vst.msk [vmem:[%s756_s9 + $0x78] sm:$0xff] %vm420_vm3, %v419_v51 }

</bundles_post_ra>
